<compile_context>
chip_gen: v6e
topology: v6e:2x2x1
jax: 0.10.0
libtpu: 0.0.40
codegen_flags: <defaults>
</compile_context>

<pallas_src>
import functools

import jax
import jax.numpy as jnp
from jax.experimental import pallas as pl
from jax.experimental.pallas import tpu as pltpu

_EPS = 1e-5
_VMEM = pl.BlockSpec(memory_space=pltpu.MemorySpace.VMEM)


# ----------------------------------------------------------------------------
# The fused Pallas kernel
# ----------------------------------------------------------------------------
def _coupling_kernel(x_ref, vecs_ref, w3_ref, w1_ref, vcol_ref, vrow_ref,
                     out_ref, h0_ref, *, N, H, W, c_half, mid, res_blocks,
                     roll_np):
    """Entire ChannelwiseAffineCoupling.forward (training, reverse=False,
    mask_config=1, coupling_bn=True) in one kernel invocation.

    Layout: activations are (channels, M) with M = N*(H+2)*(W+2) rounded up to
    a multiple of 128 on the lane axis (zero halo around each image, so the
    padding=1 conv3x3 needs no per-tap boundary masks).
    """
    f32, bf16 = jnp.float32, jnp.bfloat16
    Wp = W + 2
    m_total = x_ref.shape[1]
    inv_cnt = 1.0 / float(N * H * W)            # BN stats count = valid pixels

    valid_row = vrow_ref[...]                   # (1, M) 1.0 on interior lanes
    valid_col = vcol_ref[...]                   # (M, 1) same mask as a column

    # ---- packed-parameter unpack (order must match _pack_params) -----------
    idx = [0]

    def take(length):                            # -> (length, 1) f32 column
        v = vecs_ref[idx[0]][:length]
        idx[0] += 1
        return v

    in_bn_g, in_bn_b = take(c_half), take(c_half)
    in_b, in_skip_b = take(mid), take(mid)
    blk_vec = [tuple(take(mid) for _ in range(6)) for _ in range(res_blocks)]
    out_bn_g, out_bn_b = take(mid), take(mid)
    out_b = take(2 * c_half)
    scale, scale_shift = take(1), take(1)

    w3 = [w3_ref[i].astype(bf16) for i in range(1 + 2 * res_blocks)]  # (mid,9*mid)
    w1 = [w1_ref[i] for i in range(2 + res_blocks)]                   # (mid,mid) f32

    relu = lambda a: jnp.maximum(a, 0.0)

    def shifted(a, s):
        # y[:, m] = a[:, m + s]  (direction pinned by the init-time self-check)
        amt = (-s) % m_total if roll_np else s % m_total
        return pltpu.roll(a, shift=amt, axis=1)

    def conv3x3(a, w_flat, bias=None):
        # a: (mid, M) f32 ; w_flat: (mid, 9*mid) bf16  ->  (mid, M) f32
        a = a * valid_row                        # re-zero the halo (once/conv)
        parts = []
        for dy in (-1, 0, 1):
            for dx in (-1, 0, 1):
                s = dy * Wp + dx
                parts.append(a if s == 0 else shifted(a, s))
        stacked = jnp.concatenate(parts, axis=0).astype(bf16)   # one cast/conv
        out = jnp.dot(w_flat, stacked, preferred_element_type=f32)
        return out if bias is None else out + bias

    def conv1x1(a, w, bias):
        return jnp.dot(w, a, preferred_element_type=f32) + bias

    def bn_train(a, gamma=None, beta=None):
        # Training-mode BatchNorm2d: biased batch stats over valid lanes.
        # Two-pass (mean-centred) variance; reductions run on the MXU via a
        # matmul against the validity column (off the XLU, halo excluded).
        mean = jnp.dot(a, valid_col, preferred_element_type=f32) * inv_cnt
        cen = a - mean
        var = jnp.dot(cen * cen, valid_col, preferred_element_type=f32) * inv_cnt
        y = cen * jax.lax.rsqrt(var + _EPS)
        if gamma is not None:
            y = y * gamma + beta
        return y, var

    # ---- coupling prologue ---------------------------------------------------
    x = x_ref[...]
    on, off = x[:c_half], x[c_half:2 * c_half]
    off_bn, _ = bn_train(off, in_bn_g, in_bn_b)              # self.in_bn

    # relu(cat(off_, -off_)) + zero channel-pad to `mid` channels (so every
    # conv3x3 shares the aligned 8-channel / K = 9*mid stacked shape).
    h0_ref[...] = jnp.zeros((mid, m_total), f32)
    h0_ref[0:c_half, :] = relu(off_bn)
    h0_ref[c_half:2 * c_half, :] = relu(-off_bn)
    h0 = h0_ref[...]

    # ---- ResidualModule (res_blocks > 0, skip=True, bottleneck=False) --------
    h = conv3x3(h0, w3[0], in_b)                 # in_block (WN conv3x3, scale=False)
    out_acc = conv1x1(h, w1[0], in_skip_b)       # in_skip  (1x1, scale=True)

    for b in range(res_blocks):
        bn1_g, bn1_b, bn2_g, bn2_b, c2_b, sk_b = blk_vec[b]
        t, _ = bn_train(h, bn1_g, bn1_b)         # ResidualBlock.in_block (BN+ReLU)
        t = conv3x3(relu(t), w3[1 + 2 * b])      # conv3x3, no bias, WN direction
        t, _ = bn_train(t, bn2_g, bn2_b)
        t = conv3x3(relu(t), w3[2 + 2 * b], c2_b)  # conv3x3, bias, scale=True
        h = h + t                                # x + res_block(in_block(x))
        out_acc = out_acc + conv1x1(h, w1[1 + b], sk_b)   # out += core_skips[b](x)

    y, _ = bn_train(out_acc, out_bn_g, out_bn_b)            # out_block BN + ReLU
    rm_out = conv1x1(relu(y), w1[1 + res_blocks][:2 * c_half], out_b)

    # ---- coupling epilogue (reverse=False, coupling_bn=True, training) -------
    shift = rm_out[:c_half]
    log_rescale = scale * jnp.tanh(rm_out[c_half:2 * c_half]) + scale_shift
    on_new = on * jnp.exp(log_rescale) + shift
    on_norm, var_on = bn_train(on_new)           # out_bn (affine=False) + batch_stat
    ldj = log_rescale - 0.5 * jnp.log(var_on + _EPS)

    out_ref[0:c_half, :] = on_norm
    out_ref[c_half:2 * c_half, :] = ldj


# ----------------------------------------------------------------------------
# Plain-JAX glue: weight-norm, operand packing, wrapper
# ----------------------------------------------------------------------------
def _wn_direction(v):
    # weight_norm, scale=False: w = v / ||v|| per output channel (dim=0).
    v = v.astype(jnp.float32)
    nrm = jnp.sqrt(jnp.sum(v ** 2, axis=(1, 2, 3), keepdims=True))
    return v / nrm


def _pack_params(params, c_half, mid, res_blocks):
    """Pack the ~31 tiny parameters into 3 VMEM operands."""
    f32 = jnp.float32
    rm = params["rm"]
    slot = ((max(8, mid, 2 * c_half) + 7) // 8) * 8

    vec_list = [params["in_bn_g"], params["in_bn_b"], rm["in_b"], rm["in_skip_b"]]
    for blk in rm["blocks"]:
        vec_list += [blk["bn1_g"], blk["bn1_b"], blk["bn2_g"], blk["bn2_b"],
                     blk["c2_b"], blk["skip_b"]]
    vec_list += [rm["out_bn_g"], rm["out_bn_b"], rm["out_b"],
                 params["scale"], params["scale_shift"]]
    vecs = jnp.stack([
        jnp.pad(v.reshape(-1).astype(f32), (0, slot - v.size)) for v in vec_list
    ]).reshape(len(vec_list), slot, 1)

    def pack3(w):      # (Cout=mid, Cin<=mid, 3, 3) -> (mid, 9*mid), tap-major
        w = jnp.pad(w.astype(f32), ((0, 0), (0, mid - w.shape[1]), (0, 0), (0, 0)))
        return jnp.transpose(w, (0, 2, 3, 1)).reshape(mid, 9 * mid)

    w3_list = [pack3(_wn_direction(rm["in_w"]))]
    for blk in rm["blocks"]:
        w3_list += [pack3(_wn_direction(blk["c1_w"])), pack3(blk["c2_w"])]
    w3 = jnp.stack(w3_list)                       # (1+2R, mid, 9*mid)

    def pack1(w):      # (Cout<=mid, Cin=mid, 1, 1) -> (mid, mid), Cout zero-pad
        w = w[:, :, 0, 0].astype(f32)
        return jnp.pad(w, ((0, mid - w.shape[0]), (0, 0)))

    w1_list = ([pack1(rm["in_skip_w"])]
               + [pack1(blk["skip_w"]) for blk in rm["blocks"]]
               + [pack1(rm["out_w"])])
    w1 = jnp.stack(w1_list)                       # (2+R, mid, mid)
    return vecs, w3, w1


def coupling_forward(x_nchw, params, *, res_blocks, roll_np):
    """ChannelwiseAffineCoupling.forward(x, reverse=False), training mode,
    mask_config=1, coupling_bn=True.  Returns (x_out, log_diag_J), both NCHW."""
    n, ch, hh, ww = x_nchw.shape
    c_half = ch // 2
    mid = params["rm"]["in_b"].shape[0]
    assert 2 * c_half <= mid and mid % 8 == 0

    Hp, Wp = hh + 2, ww + 2
    m_used = n * Hp * Wp
    m_total = ((m_used + 127) // 128) * 128

    # NCHW -> lane-dense (C, N*(H+2)*(W+2)) with a zero halo around each image.
    # TODO(synk): in production keep this layout end-to-end to drop the relayout.
    x_cm = jnp.transpose(x_nchw.astype(jnp.float32), (1, 0, 2, 3))
    x_pad = jnp.pad(x_cm, ((0, 0), (0, 0), (1, 1), (1, 1))).reshape(ch, m_used)
    x_pad = jnp.pad(x_pad, ((0, 0), (0, m_total - m_used)))

    lane = jnp.arange(m_total)
    hp = (lane % (Hp * Wp)) // Wp
    wp = lane % Wp
    valid = ((lane < m_used) & (hp >= 1) & (hp <= hh)
             & (wp >= 1) & (wp <= ww)).astype(jnp.float32)
    valid_row = valid.reshape(1, m_total)
    valid_col = valid.reshape(m_total, 1)

    vecs, w3, w1 = _pack_params(params, c_half, mid, res_blocks)

    kernel = functools.partial(
        _coupling_kernel, N=n, H=hh, W=ww, c_half=c_half, mid=mid,
        res_blocks=res_blocks, roll_np=roll_np)

    # TODO(synk): for production-sized M, tile the lane axis with a "parallel"
    # grid + per-tile BN partial stats (tile sized to v7x's 64 MiB VMEM).
    out = pl.pallas_call(
        kernel,
        out_shape=jax.ShapeDtypeStruct((2 * c_half, m_total), jnp.float32),
        in_specs=[_VMEM] * 6,
        out_specs=_VMEM,
        scratch_shapes=[pltpu.VMEM((mid, m_total), jnp.float32)],
    )(x_pad, vecs, w3, w1, valid_col, valid_row)

    out = out[:, :m_used].reshape(2 * c_half, n, Hp, Wp)[:, :, 1:1 + hh, 1:1 + ww]
    on_out = jnp.transpose(out[:c_half], (1, 0, 2, 3))
    ldj_on = jnp.transpose(out[c_half:], (1, 0, 2, 3))
    off = x_nchw[:, c_half:, :, :].astype(jnp.float32)

    # mask_config == 1: x = cat((on, off)); log_diag_J = cat((log_rescale', 0)).
    x_out = jnp.concatenate([on_out, off], axis=1)
    ldj = jnp.concatenate([ldj_on, jnp.zeros_like(ldj_on)], axis=1)
    return x_out, ldj


def _probe_roll_convention():
    """Detect pltpu.roll's rotation direction ONCE; raise loudly if it is
    neither of the two valid rotations (no silent spatial flip possible; the
    tightened XLA-reference assert below is a second guard)."""
    def k(x_ref, o_ref):
        o_ref[...] = pltpu.roll(x_ref[...], shift=1, axis=1)
    x = jnp.tile(jnp.arange(128, dtype=jnp.float32)[None, :], (8, 1))
    y = pl.pallas_call(k, out_shape=jax.ShapeDtypeStruct((8, 128), jnp.float32),
                       in_specs=[_VMEM], out_specs=_VMEM)(x)
    if bool(jnp.all(y[0] == jnp.roll(x[0], 1))):
        return True          # numpy convention: result[i] = x[i-1]
    if bool(jnp.all(y[0] == jnp.roll(x[0], -1))):
        return False         # opposite convention: result[i] = x[i+1]
    raise RuntimeError("unrecognized pltpu.roll semantics")


# ----------------------------------------------------------------------------
# Pure-JAX (XLA) reference of the same forward pass, for numerical validation
# ----------------------------------------------------------------------------
def reference_forward(x, params):
    f32 = jnp.float32
    x = x.astype(f32)

    def bn(v, g=None, b=None):
        mean = jnp.mean(v, axis=(0, 2, 3), keepdims=True)
        var = jnp.mean((v - mean) ** 2, axis=(0, 2, 3), keepdims=True)
        y = (v - mean) / jnp.sqrt(var + _EPS)
        if g is not None:
            y = y * g.reshape(1, -1, 1, 1) + b.reshape(1, -1, 1, 1)
        return y, var

    def conv(v, w, b=None, pad=0):
        y = jax.lax.conv_general_dilated(
            v, w.astype(f32), (1, 1), [(pad, pad), (pad, pad)],
            dimension_numbers=("NCHW", "OIHW", "NCHW"))
        return y if b is None else y + b.reshape(1, -1, 1, 1)

    relu = jax.nn.relu
    c_half = x.shape[1] // 2
    on, off = x[:, :c_half], x[:, c_half:]
    rm = params["rm"]

    off_bn, _ = bn(off, params["in_bn_g"], params["in_bn_b"])
    h = relu(jnp.concatenate([off_bn, -off_bn], axis=1))
    h = conv(h, _wn_direction(rm["in_w"]), rm["in_b"], pad=1)
    out = conv(h, rm["in_skip_w"], rm["in_skip_b"])
    for blk in rm["blocks"]:
        t, _ = bn(h, blk["bn1_g"], blk["bn1_b"])
        t = conv(relu(t), _wn_direction(blk["c1_w"]), None, pad=1)
        t, _ = bn(t, blk["bn2_g"], blk["bn2_b"])
        t = conv(relu(t), blk["c2_w"], blk["c2_b"], pad=1)
        h = h + t
        out = out + conv(h, blk["skip_w"], blk["skip_b"])
    y, _ = bn(out, rm["out_bn_g"], rm["out_bn_b"])
    rm_out = conv(relu(y), rm["out_w"], rm["out_b"])

    shift, lr = rm_out[:, :c_half], rm_out[:, c_half:]
    lr = params["scale"].reshape(()) * jnp.tanh(lr) + params["scale_shift"].reshape(())
    on_new = on * jnp.exp(lr) + shift
    on_n, var_on = bn(on_new)
    ldj = lr - 0.5 * jnp.log(var_on + _EPS)
    x_out = jnp.concatenate([on_n, off], axis=1)
    ldj_full = jnp.concatenate([ldj, jnp.zeros_like(ldj)], axis=1)
    return x_out, ldj_full


# ----------------------------------------------------------------------------
# Parameter init (random small weights; BN at PyTorch defaults gamma=1/beta=0)
# ----------------------------------------------------------------------------
def init_params(key, in_out_dim, mid_dim, res_blocks):
    c_half = in_out_dim // 2
    keys = iter(jax.random.split(key, 128))
    nrm = lambda shape, s: s * jax.random.normal(next(keys), shape, jnp.float32)
    conv_w = lambda o, i, k: nrm((o, i, k, k), 0.1)
    conv_b = lambda o: nrm((o,), 0.05)

    rm = {
        "in_w": conv_w(mid_dim, in_out_dim, 3), "in_b": conv_b(mid_dim),
        "in_skip_w": conv_w(mid_dim, mid_dim, 1), "in_skip_b": conv_b(mid_dim),
        "out_bn_g": jnp.ones((mid_dim,), jnp.float32),
        "out_bn_b": jnp.zeros((mid_dim,), jnp.float32),
        "out_w": conv_w(in_out_dim, mid_dim, 1), "out_b": conv_b(in_out_dim),
        "blocks": [],
    }
    for _ in range(res_blocks):
        rm["blocks"].append({
            "bn1_g": jnp.ones((mid_dim,), jnp.float32),
            "bn1_b": jnp.zeros((mid_dim,), jnp.float32),
            "c1_w": conv_w(mid_dim, mid_dim, 3),
            "bn2_g": jnp.ones((mid_dim,), jnp.float32),
            "bn2_b": jnp.zeros((mid_dim,), jnp.float32),
            "c2_w": conv_w(mid_dim, mid_dim, 3), "c2_b": conv_b(mid_dim),
            "skip_w": conv_w(mid_dim, mid_dim, 1), "skip_b": conv_b(mid_dim),
        })
    return {
        "in_bn_g": jnp.ones((c_half,), jnp.float32),
        "in_bn_b": jnp.zeros((c_half,), jnp.float32),
        "rm": rm,
        # PyTorch initializes these to 0 (identity coupling); use non-zero
        # values so the tanh/exp path is actually exercised.
        "scale": jnp.full((1,), 0.5, jnp.float32),
        "scale_shift": jnp.full((1,), 0.1, jnp.float32),
    }


# ----------------------------------------------------------------------------
if __name__ == "__main__":
    key = jax.random.PRNGKey(0)
    kx, kp = jax.random.split(key)

    N, IN_OUT_DIM, MID_DIM, HW = 2, 4, 8, 16
    RES_BLOCKS = 2

    x = jax.random.normal(kx, (N, IN_OUT_DIM, HW, HW), jnp.float32)   # NCHW
    params = init_params(kp, IN_OUT_DIM, MID_DIM, RES_BLOCKS)

    roll_np = _probe_roll_convention()

    fwd = jax.jit(functools.partial(coupling_forward,
                                    res_blocks=RES_BLOCKS, roll_np=roll_np))
    x_out, ldj = fwd(x, params)
    jax.block_until_ready((x_out, ldj))

    assert x_out.shape == (N, IN_OUT_DIM, HW, HW), x_out.shape
    assert ldj.shape == (N, IN_OUT_DIM, HW, HW), ldj.shape
    assert bool(jnp.all(jnp.isfinite(x_out))) and bool(jnp.all(jnp.isfinite(ldj)))

    # Numerical check against the plain-XLA reference.  conv3x3 matmuls run in
    # bf16 (f32 accumulation); everything else (1x1 convs, BN stats, affine
    # coupling) is f32, so the bf16 noise stays well inside these bounds while
    # a spatial flip / weight-norm / tap-ordering bug would blow them up.
    x_ref, ldj_ref = jax.jit(reference_forward)(x, params)
    err_x = float(jnp.max(jnp.abs(x_out - x_ref)))
    err_j = float(jnp.max(jnp.abs(ldj - ldj_ref)))
    rel_x = float(jnp.sqrt(jnp.sum((x_out - x_ref) ** 2) / jnp.sum(x_ref ** 2)))
    assert err_x < 0.2 and err_j < 0.1 and rel_x < 0.05, (err_x, err_j, rel_x)

    print("KERNEL_OK")
</pallas_src>

<mosaic_0001>
module attributes {stable_mosaic.version = 11 : i64} {
  func.func @k(%arg0: memref<8x128xf32, #tpu.memory_space<vmem>>, %arg1: memref<8x128xf32, #tpu.memory_space<vmem>>) attributes {dimension_semantics = [], scalar_prefetch = 0 : i64, scratch_operands = 0 : i64, tpu.core_type = #tpu.core_type<tc>} {
    %c0 = arith.constant 0 : index
    %c0_0 = arith.constant 0 : index
    %0 = vector.load %arg0[%c0, %c0_0] : memref<8x128xf32, #tpu.memory_space<vmem>>, vector<8x128xf32>
    %c1_i32 = arith.constant 1 : i32
    %1 = tpu.dynamic_rotate %0 by %c1_i32 dim 1 : vector<8x128xf32>, i32 -> vector<8x128xf32>
    %c0_1 = arith.constant 0 : index
    %c0_2 = arith.constant 0 : index
    %2 = vector.load %arg1[%c0_1, %c0_2] : memref<8x128xf32, #tpu.memory_space<vmem>>, vector<8x128xf32>
    tpu.vector_store %arg1[%c0_1, %c0_2], %1 {strides = array<i32>} : memref<8x128xf32, #tpu.memory_space<vmem>>, vector<8x128xf32>,
    return
  }
}

</mosaic_0001>

<bundles_post_ra>
// kernel: tpu_custom_call.1
= control target key start
LH: loop header
LB: loop body
LE: loop exit
PB: predicated region body
PF: predicated region fallthrough
CT: control target
= control target key end

     0   :  { %6 = vsyncpa [#allocation3], 0  ;;  %s106_s0 = inlined_call_operand.hbm [shape: f32[8,128], index: 0, kind: input, shape index: {}]   ;;  %s107_s1 = inlined_call_operand.hbm [shape: f32[8,128], index: 1, kind: output, shape index: {}]  }
   0x1   :  { %7 = vsyncpa [#allocation4], 0  ;;  %s87_s6 = smov [#allocation2]  }
   0x2   :  { %s14_s7 = sshll.u32 %s87_s6, 4  ;;  %s15_s7 = int_to_ptr.vmem [resolvable:$true] %s14_s7 }
   0x3   :  { %s51_s8 = scalar_lea.vmem %s15_s7, 128  ;;  %p56_p1 = scmp.lt.s32.totalorder %s15_s7, %s15_s7 }
   0x4   :  { %p52_p0 = scmp.ne.s32.totalorder %s15_s7, %s51_s8  ;;  %p57_p2 = scmp.lt.s32.totalorder %s51_s8, %s51_s8 }
   0x6   :  { %p58_p3 = por %p57_p2, %p56_p1 }
   0x8   :  { %p59_p4 = pnand %p58_p3, %p52_p0 }
   0xa   :  { %62 = shalt.err (!%p59_p4)
}
   0xb   :  { %17 = dma.hbm_to_vmem [thread:$0]  %s106_s0, 128, %s15_s7, [#allocation3]  }
   0xc   :  { %83 = dma.done.wait [#allocation3], 128  }
   0xd   :  { %84 = vsyncadd [#allocation3], 4294967168  ;;  %v21_v0 = vld [vmem:[#allocation2] sm:$0xff]  ;;  %s88_s11 = smov 1   ;;  %s89_s12 = smov [#allocation5]  }
   0xe   :  { %22 = vrot.lane.b32.xlu0 %v21_v0, %s88_s11  ;;  %s31_s13 = sshll.u32 %s89_s12, 4  ;;  %s32_s13 = int_to_ptr.vmem [resolvable:$true] %s31_s13 }
   0xf   :  { %s63_s14 = scalar_lea.vmem %s32_s13, 128  ;;  %p68_p6 = scmp.lt.s32.totalorder %s32_s13, %s32_s13 }
  0x10   :  { %p64_p5 = scmp.ne.s32.totalorder %s32_s13, %s63_s14  ;;  %p69_p7 = scmp.lt.s32.totalorder %s63_s14, %s63_s14 }
  0x12   :  { %p70_p8 = por %p69_p7, %p68_p6 }
  0x14   :  { %p71_p9 = pnand %p70_p8, %p64_p5 }
  0x80   :  { %v23_v1 = vpop.permute.xlu0 %22 }
  0x81   :  { %24 = vst [vmem:[#allocation5] sm:$0xff] %v23_v1 }
  0x82   :  { %74 = shalt.err (!%p71_p9)
}
  0x83   :  { %34 = dma.vmem_to_hbm [thread:$0]  %s32_s13, 128, %s107_s1, [#allocation4]  }
  0x84   :  { %85 = dma.done.wait [#allocation4], 128  }
  0x85   :  { %86 = vsyncadd [#allocation4], 4294967168 }
  0x86   :  { %38 = vsyncpa [#allocation3], 1 }
  0x87   :  { %39 = vsyncpa [#allocation4], 1 }

</bundles_post_ra>
